<compile_context>
chip_gen: v5e
topology: v5e:2x2
jax: 0.10.0
libtpu: 0.0.40
codegen_flags: <defaults>
</compile_context>

<pallas_src>
import functools
import math

import numpy as np
import jax
import jax.numpy as jnp
from jax import lax
from jax.experimental import pallas as pl
from jax.experimental.pallas import tpu as pltpu


def _vmem_capacity_bytes():
    """Physical VMEM per TensorCore (chip-aware; conservative v7x fallback)."""
    try:
        info = pltpu.get_tpu_info()
        cap = getattr(info, "vmem_capacity_bytes", None)
        if cap:
            return int(cap)
    except Exception:
        pass
    return 64 << 20


def _const_block_spec(shape):
    """Grid-invariant operand: constant index_map, single-buffered if supported."""
    idx = lambda b: (0,) * len(shape)
    try:
        return pl.BlockSpec(shape, idx, pipeline_mode=pl.Buffered(1))
    except TypeError:  # older BlockSpec without pipeline_mode kwarg
        return pl.BlockSpec(shape, idx)


def _mil_kernel(x_ref, w13_ref, b13_ref, w2_ref, b2_ref, o_ref, *,
                gated, hidden_dim, flatten_out):
    # x_ref:  (TB, bag, D)  in the input dtype (f32 or bf16)
    # w13:    (D, 2H) gated / (D, H);  b13: (1, 2H) / (1, H), f32
    # w2:     (H, K);                  b2:  (1, K), f32
    # o_ref:  (TB, K*D) if flatten_out else (TB, K, D), f32
    TB, bag, D = x_ref.shape
    K = w2_ref.shape[1]

    x = x_ref[...]
    xf = x.reshape(TB * bag, D)               # flatten bags: per-instance math

    # fc1 (+ fc3 when gated) in one MXU pass; operands keep the input dtype,
    # accumulation is f32.
    h = jnp.dot(xf, w13_ref[...], preferred_element_type=jnp.float32)
    h = h + b13_ref[...]                      # bias already f32 (cast hoisted)
    if gated:
        # tanh + sigmoid both hit the single EUP slot -- do not pad H.
        a = jnp.tanh(h[:, :hidden_dim]) * jax.nn.sigmoid(h[:, hidden_dim:])
    else:
        a = jnp.tanh(h)

    # fc2: MXU operands stay in the input dtype (bf16 stays bf16), f32 acc.
    logits = jnp.dot(a.astype(x.dtype), w2_ref[...],
                     preferred_element_type=jnp.float32)
    logits = (logits + b2_ref[...]).reshape(TB, bag, K)

    # softmax over the bag (instance) axis, per bag / per attention head (f32).
    m = jnp.max(logits, axis=1, keepdims=True)
    p = jnp.exp(logits - m)
    p = p / jnp.sum(p, axis=1, keepdims=True)          # (TB, bag, K)

    # pooled[t, k, d] = sum_b p[t, b, k] * x[t, b, d]
    if K <= 8:
        # VPU path: K broadcast-multiply + sublane reductions beat TB tiny
        # (M=K) MXU pushes that are dominated by fill/drain latency.
        xf32 = x.astype(jnp.float32)
        parts = [jnp.sum(p[:, :, k:k + 1] * xf32, axis=1)        # (TB, D)
                 for k in range(K)]
        if flatten_out:
            pooled = jnp.concatenate(parts, axis=-1)             # (TB, K*D)
        else:
            pooled = jnp.stack(parts, axis=1)                    # (TB, K, D)
    else:
        pooled = lax.dot_general(
            p.astype(x.dtype), x,
            dimension_numbers=(((1,), (1,)), ((0,), (0,))),
            preferred_element_type=jnp.float32)                  # (TB, K, D)
        if flatten_out:
            pooled = pooled.reshape(TB, K * D)

    o_ref[...] = pooled.astype(o_ref.dtype)


def mil_attention_pool(x, bag_lengths, params, *, gated, block_bags=128,
                       compute_dtype=None):
    """x: (total_instances, input_dim); bag_lengths: (batch,), all equal.

    bag_lengths must be concrete host values (static bag size); under jit,
    pass them as static. compute_dtype (e.g. jnp.bfloat16) optionally casts
    x and weights in the wrapper for bf16-native MXU operands.
    """
    bl = np.asarray(bag_lengths)
    if not np.all(bl == bl[0]):
        # TODO(synk): ragged bag_lengths path is not kernelized.
        raise NotImplementedError("only the all-equal bag_lengths path is kernelized")
    batch = int(bl.shape[0])
    bag = int(bl[0])

    w1, b1 = params["w1"], params["b1"]
    w2, b2 = params["w2"], params["b2"]
    D, H = w1.shape
    K = w2.shape[1]
    assert x.shape == (batch * bag, D)

    if compute_dtype is not None:
        x = x.astype(compute_dtype)
        w1 = w1.astype(compute_dtype)
        w2 = w2.astype(compute_dtype)

    # Pack fc1/fc3 into one wide projection; biases pre-cast to f32 once.
    if gated:
        w3 = params["w3"]
        if compute_dtype is not None:
            w3 = w3.astype(compute_dtype)
        w13 = jnp.concatenate([w1, w3], axis=1)                           # (D, 2H)
        b13 = jnp.concatenate([b1, params["b3"]]).reshape(1, 2 * H).astype(jnp.float32)
    else:
        w13 = w1
        b13 = b1.reshape(1, H).astype(jnp.float32)
    b2r = b2.reshape(1, K).astype(jnp.float32)
    H2 = w13.shape[1]

    in_dtype = x.dtype
    itemsize = jnp.dtype(in_dtype).itemsize
    out_width = K * D

    # --- chip-aware VMEM budgeting / tile selection --------------------------
    vmem_phys = _vmem_capacity_bytes()
    weight_bytes = (D * H2) * jnp.dtype(w13.dtype).itemsize + H2 * 4 \
        + (H * K) * jnp.dtype(w2.dtype).itemsize + K * 4
    per_bag = (2 * bag * D * itemsize        # x block, double-buffered
               + 2 * K * D * 4               # out block (f32), double-buffered
               + bag * (H2 + K) * 4          # f32 hidden / logit slabs
               + bag * K * 4                 # softmax weights
               + bag * D * 4)                # relayout / f32-copy headroom
    tile_budget = int(0.70 * vmem_phys) - weight_bytes - (2 << 20)
    tb_cap = max(1, tile_budget // per_bag)

    TB = min(batch, block_bags, tb_cap)
    if batch >= 16:
        # keep >= 2 grid steps so "parallel" can shard across v7x's two TCs
        TB = min(TB, -(-batch // 2))
    # Align TB so TB*bag is a multiple of the sublane pack factor (free flatten).
    pack = 16 if itemsize == 2 else 8
    step = pack // math.gcd(bag, pack)
    if TB >= step:
        TB = (TB // step) * step
    TB = max(1, min(TB, tb_cap))

    # Output layout: lane-dense (TB, K*D) when D is lane-sparse, else (TB, K, D)
    # (the (batch, K*D) flatten then happens for free in the wrapper).
    flatten_out = (D % 128) != 0
    if flatten_out and TB < batch:
        if TB >= 8:
            TB = (TB // 8) * 8          # 2-D out block: sublane dim 8-aligned
        elif batch <= tb_cap and batch <= max(block_bags, 8):
            TB = batch                  # tiny batch: single full-batch block
        else:
            flatten_out = False         # fall back to 3-D (TB, K, D) output

    grid = int(pl.cdiv(batch, TB))      # partial last block: OOB writes masked

    vmem_est = 2 * weight_bytes + TB * per_bag + (1 << 20)
    vmem_limit = max(int(1.3 * vmem_est), 32 << 20)
    vmem_limit = min(vmem_limit, int(0.85 * vmem_phys))
    vmem_limit = max(vmem_limit, min(vmem_est + (4 << 20), int(0.90 * vmem_phys)))

    x3 = x.reshape(batch, bag, D)       # metadata-only reshape, no HBM copy

    kernel = functools.partial(_mil_kernel, gated=gated, hidden_dim=H,
                               flatten_out=flatten_out)

    if flatten_out:
        out_shape = jax.ShapeDtypeStruct((batch, out_width), jnp.float32)
        out_spec = pl.BlockSpec((TB, out_width), lambda b: (b, 0))
    else:
        out_shape = jax.ShapeDtypeStruct((batch, K, D), jnp.float32)
        out_spec = pl.BlockSpec((TB, K, D), lambda b: (b, 0, 0))

    out = pl.pallas_call(
        kernel,
        out_shape=out_shape,
        grid_spec=pltpu.PrefetchScalarGridSpec(
            num_scalar_prefetch=0,
            grid=(grid,),
            in_specs=[
                pl.BlockSpec((TB, bag, D), lambda b: (b, 0, 0)),
                _const_block_spec(w13.shape),
                _const_block_spec(b13.shape),
                _const_block_spec((H, K)),
                _const_block_spec((1, K)),
            ],
            out_specs=out_spec,
        ),
        compiler_params=pltpu.CompilerParams(
            dimension_semantics=("parallel",),
            vmem_limit_bytes=int(vmem_limit),
        ),
    )(x3, w13, b13, w2, b2r)

    if not flatten_out:
        out = out.reshape(batch, out_width)
    return out                          # (batch, K*D), matches torch's x.view(batch, -1)


def init_params(key, input_dim, hidden_dim, n_attentions):
    """Deterministic init mimicking nn.Linear default (uniform +- 1/sqrt(fan_in)).
    Weights are stored pre-transposed as (in, out)."""
    k1, k2, k3, k4, k5, k6 = jax.random.split(key, 6)

    def lin(kw, kb, fan_in, fan_out):
        bound = 1.0 / jnp.sqrt(fan_in)
        w = jax.random.uniform(kw, (fan_in, fan_out), jnp.float32, -bound, bound)
        b = jax.random.uniform(kb, (fan_out,), jnp.float32, -bound, bound)
        return w, b

    w1, b1 = lin(k1, k2, input_dim, hidden_dim)
    w2, b2 = lin(k3, k4, hidden_dim, n_attentions)
    w3, b3 = lin(k5, k6, input_dim, hidden_dim)
    return {"w1": w1, "b1": b1, "w2": w2, "b2": b2, "w3": w3, "b3": b3}


def mil_attention_pool_ref(x, bag_lengths, params, *, gated):
    """Pure-JAX reference of the PyTorch forward (all-equal bag_lengths path)."""
    batch = bag_lengths.shape[0]
    bag = int(bag_lengths[0])
    a = jnp.tanh(x @ params["w1"] + params["b1"])
    if gated:
        a = a * jax.nn.sigmoid(x @ params["w3"] + params["b3"])
    A = a @ params["w2"] + params["b2"]                       # (N, K)
    A = A.reshape(batch, bag, -1).transpose(0, 2, 1)          # (B, K, bag)
    A = jax.nn.softmax(A, axis=2)
    pooled = jnp.einsum("bkn,bnd->bkd", A, x.reshape(batch, bag, -1))
    return pooled.reshape(batch, -1)


if __name__ == "__main__":
    batch, bag, input_dim, hidden_dim, n_att = 2, 8, 32, 16, 4

    key = jax.random.PRNGKey(0)
    kx, kp = jax.random.split(key)
    x = jax.random.normal(kx, (batch * bag, input_dim), jnp.float32)
    bag_lengths = jnp.full((batch,), bag, dtype=jnp.int32)
    params = init_params(kp, input_dim, hidden_dim, n_att)

    # gated path, f32 operands.
    ref_g = mil_attention_pool_ref(x, bag_lengths, params, gated=True)
    out_g = jax.block_until_ready(
        mil_attention_pool(x, bag_lengths, params, gated=True))
    assert out_g.shape == (batch, n_att * input_dim)
    assert jnp.allclose(out_g, ref_g, atol=1e-4, rtol=1e-4), "f32 gated mismatch"

    # ungated path, f32 operands.
    ref_u = mil_attention_pool_ref(x, bag_lengths, params, gated=False)
    out_u = jax.block_until_ready(
        mil_attention_pool(x, bag_lengths, params, gated=False))
    assert jnp.allclose(out_u, ref_u, atol=1e-4, rtol=1e-4), "f32 ungated mismatch"

    # gated path, bf16 MXU operands (f32 accumulation / softmax).
    out_bf = jax.block_until_ready(
        mil_attention_pool(x, bag_lengths, params, gated=True,
                           compute_dtype=jnp.bfloat16))
    assert jnp.allclose(out_bf, ref_g, atol=5e-2, rtol=5e-2), "bf16 mismatch"

    print("KERNEL_OK")
</pallas_src>

<mosaic_0001>
module attributes {stable_mosaic.version = 11 : i64} {
  func.func @_mil_kernel(%arg0: i32, %arg1: memref<2x8x32xf32, #tpu.memory_space<vmem>>, %arg2: memref<32x32xf32, #tpu.memory_space<vmem>>, %arg3: memref<1x32xf32, #tpu.memory_space<vmem>>, %arg4: memref<16x4xf32, #tpu.memory_space<vmem>>, %arg5: memref<1x4xf32, #tpu.memory_space<vmem>>, %arg6: memref<2x128xf32, #tpu.memory_space<vmem>>) attributes {dimension_semantics = [#tpu.dimension_semantics<parallel>], iteration_bounds = array<i64: 1>, scalar_prefetch = 0 : i64, scratch_operands = 0 : i64, tpu.core_type = #tpu.core_type<tc>, window_params = [{transform_indices = @transform_0, window_bounds = array<i64: 2, 8, 32>}, {pipeline_mode = #tpu.pipeline_mode<synchronous>, transform_indices = @transform_1, window_bounds = array<i64: 32, 32>}, {pipeline_mode = #tpu.pipeline_mode<synchronous>, transform_indices = @transform_2, window_bounds = array<i64: 1, 32>}, {pipeline_mode = #tpu.pipeline_mode<synchronous>, transform_indices = @transform_3, window_bounds = array<i64: 16, 4>}, {pipeline_mode = #tpu.pipeline_mode<synchronous>, transform_indices = @transform_4, window_bounds = array<i64: 1, 4>}, {transform_indices = @transform_5, window_bounds = array<i64: 2, 128>}]} {
    %c0 = arith.constant 0 : index
    %c0_0 = arith.constant 0 : index
    %c0_1 = arith.constant 0 : index
    %0 = vector.load %arg1[%c0, %c0_0, %c0_1] : memref<2x8x32xf32, #tpu.memory_space<vmem>>, vector<2x8x32xf32>
    %1 = vector.shape_cast %0 : vector<2x8x32xf32> to vector<16x32xf32>
    %c0_2 = arith.constant 0 : index
    %c0_3 = arith.constant 0 : index
    %2 = vector.load %arg2[%c0_2, %c0_3] : memref<32x32xf32, #tpu.memory_space<vmem>>, vector<32x32xf32>
    %cst = arith.constant dense<0.000000e+00> : vector<16x32xf32>
    %3 = tpu.matmul %1, %2, %cst {dimension_numbers = #tpu.dot_dimension_numbers<[1], [0], [0], [1], [0, 0, 1, 1], [], []>} : vector<16x32xf32>, vector<32x32xf32>, vector<16x32xf32> -> vector<16x32xf32>
    %c0_4 = arith.constant 0 : index
    %c0_5 = arith.constant 0 : index
    %4 = vector.load %arg3[%c0_4, %c0_5] : memref<1x32xf32, #tpu.memory_space<vmem>>, vector<1x32xf32>
    %5 = vector.broadcast %4 : vector<1x32xf32> to vector<16x32xf32>
    %6 = arith.addf %3, %5 : vector<16x32xf32>
    %7 = vector.extract_strided_slice %6 {offsets = [0, 0], sizes = [16, 16], strides = [1, 1]} : vector<16x32xf32> to vector<16x16xf32>
    %8 = math.tanh %7 : vector<16x16xf32>
    %9 = vector.extract_strided_slice %6 {offsets = [0, 16], sizes = [16, 16], strides = [1, 1]} : vector<16x32xf32> to vector<16x16xf32>
    %10 = arith.negf %9 : vector<16x16xf32>
    %11 = math.exp %10 : vector<16x16xf32>
    %cst_6 = arith.constant 1.000000e+00 : f32
    %12 = vector.broadcast %cst_6 : f32 to vector<16x16xf32>
    %13 = arith.addf %12, %11 : vector<16x16xf32>
    %14 = arith.divf %12, %13 : vector<16x16xf32>
    %15 = arith.mulf %8, %14 : vector<16x16xf32>
    %c0_7 = arith.constant 0 : index
    %c0_8 = arith.constant 0 : index
    %16 = vector.load %arg4[%c0_7, %c0_8] : memref<16x4xf32, #tpu.memory_space<vmem>>, vector<16x4xf32>
    %cst_9 = arith.constant dense<0.000000e+00> : vector<16x4xf32>
    %17 = tpu.matmul %15, %16, %cst_9 {dimension_numbers = #tpu.dot_dimension_numbers<[1], [0], [0], [1], [0, 0, 1, 1], [], []>} : vector<16x16xf32>, vector<16x4xf32>, vector<16x4xf32> -> vector<16x4xf32>
    %c0_10 = arith.constant 0 : index
    %c0_11 = arith.constant 0 : index
    %18 = vector.load %arg5[%c0_10, %c0_11] : memref<1x4xf32, #tpu.memory_space<vmem>>, vector<1x4xf32>
    %19 = vector.broadcast %18 : vector<1x4xf32> to vector<16x4xf32>
    %20 = arith.addf %17, %19 : vector<16x4xf32>
    %21 = vector.shape_cast %20 : vector<16x4xf32> to vector<2x8x4xf32>
    %cst_12 = arith.constant dense<0xFF800000> : vector<2x4xf32>
    %22 = vector.multi_reduction <maximumf>, %21, %cst_12 [1] : vector<2x8x4xf32> to vector<2x4xf32>
    %23 = vector.shape_cast %22 : vector<2x4xf32> to vector<2x1x4xf32>
    %24 = vector.broadcast %23 : vector<2x1x4xf32> to vector<2x8x4xf32>
    %25 = arith.subf %21, %24 : vector<2x8x4xf32>
    %26 = math.exp %25 : vector<2x8x4xf32>
    %cst_13 = arith.constant dense<0.000000e+00> : vector<2x4xf32>
    %27 = vector.multi_reduction <add>, %26, %cst_13 [1] : vector<2x8x4xf32> to vector<2x4xf32>
    %28 = vector.shape_cast %27 : vector<2x4xf32> to vector<2x1x4xf32>
    %29 = vector.broadcast %28 : vector<2x1x4xf32> to vector<2x8x4xf32>
    %30 = arith.divf %26, %29 : vector<2x8x4xf32>
    %31 = vector.extract_strided_slice %30 {offsets = [0, 0, 0], sizes = [2, 8, 1], strides = [1, 1, 1]} : vector<2x8x4xf32> to vector<2x8x1xf32>
    %32 = vector.broadcast %31 : vector<2x8x1xf32> to vector<2x8x32xf32>
    %33 = arith.mulf %32, %0 : vector<2x8x32xf32>
    %cst_14 = arith.constant dense<0.000000e+00> : vector<2x32xf32>
    %34 = vector.multi_reduction <add>, %33, %cst_14 [1] : vector<2x8x32xf32> to vector<2x32xf32>
    %35 = vector.extract_strided_slice %30 {offsets = [0, 0, 1], sizes = [2, 8, 1], strides = [1, 1, 1]} : vector<2x8x4xf32> to vector<2x8x1xf32>
    %36 = vector.broadcast %35 : vector<2x8x1xf32> to vector<2x8x32xf32>
    %37 = arith.mulf %36, %0 : vector<2x8x32xf32>
    %cst_15 = arith.constant dense<0.000000e+00> : vector<2x32xf32>
    %38 = vector.multi_reduction <add>, %37, %cst_15 [1] : vector<2x8x32xf32> to vector<2x32xf32>
    %39 = vector.extract_strided_slice %30 {offsets = [0, 0, 2], sizes = [2, 8, 1], strides = [1, 1, 1]} : vector<2x8x4xf32> to vector<2x8x1xf32>
    %40 = vector.broadcast %39 : vector<2x8x1xf32> to vector<2x8x32xf32>
    %41 = arith.mulf %40, %0 : vector<2x8x32xf32>
    %cst_16 = arith.constant dense<0.000000e+00> : vector<2x32xf32>
    %42 = vector.multi_reduction <add>, %41, %cst_16 [1] : vector<2x8x32xf32> to vector<2x32xf32>
    %43 = vector.extract_strided_slice %30 {offsets = [0, 0, 3], sizes = [2, 8, 1], strides = [1, 1, 1]} : vector<2x8x4xf32> to vector<2x8x1xf32>
    %44 = vector.broadcast %43 : vector<2x8x1xf32> to vector<2x8x32xf32>
    %45 = arith.mulf %44, %0 : vector<2x8x32xf32>
    %cst_17 = arith.constant dense<0.000000e+00> : vector<2x32xf32>
    %46 = vector.multi_reduction <add>, %45, %cst_17 [1] : vector<2x8x32xf32> to vector<2x32xf32>
    %47 = tpu.concatenate %34, %38, %42, %46 in 1 : vector<2x32xf32>, vector<2x32xf32>, vector<2x32xf32>, vector<2x32xf32> -> vector<2x128xf32>
    %c0_18 = arith.constant 0 : index
    %c0_19 = arith.constant 0 : index
    %48 = vector.load %arg6[%c0_18, %c0_19] : memref<2x128xf32, #tpu.memory_space<vmem>>, vector<2x128xf32>
    tpu.vector_store %arg6[%c0_18, %c0_19], %47 {strides = array<i32>} : memref<2x128xf32, #tpu.memory_space<vmem>>, vector<2x128xf32>,
    return
  }
  func.func @transform_0(%arg0: i32) -> (i32, i32, i32) {
    %c0_i32 = arith.constant 0 : i32
    %c0_i32_0 = arith.constant 0 : i32
    %c0_i32_1 = arith.constant 0 : i32
    return %arg0, %c0_i32, %c0_i32_0 : i32, i32, i32
  }
  func.func @transform_1(%arg0: i32) -> (i32, i32) {
    %c0_i32 = arith.constant 0 : i32
    %c0_i32_0 = arith.constant 0 : i32
    %c0_i32_1 = arith.constant 0 : i32
    return %c0_i32, %c0_i32_0 : i32, i32
  }
  func.func @transform_2(%arg0: i32) -> (i32, i32) {
    %c0_i32 = arith.constant 0 : i32
    %c0_i32_0 = arith.constant 0 : i32
    %c0_i32_1 = arith.constant 0 : i32
    return %c0_i32, %c0_i32_0 : i32, i32
  }
  func.func @transform_3(%arg0: i32) -> (i32, i32) {
    %c0_i32 = arith.constant 0 : i32
    %c0_i32_0 = arith.constant 0 : i32
    %c0_i32_1 = arith.constant 0 : i32
    return %c0_i32, %c0_i32_0 : i32, i32
  }
  func.func @transform_4(%arg0: i32) -> (i32, i32) {
    %c0_i32 = arith.constant 0 : i32
    %c0_i32_0 = arith.constant 0 : i32
    %c0_i32_1 = arith.constant 0 : i32
    return %c0_i32, %c0_i32_0 : i32, i32
  }
  func.func @transform_5(%arg0: i32) -> (i32, i32) {
    %c0_i32 = arith.constant 0 : i32
    %c0_i32_0 = arith.constant 0 : i32
    return %arg0, %c0_i32 : i32, i32
  }
}

</mosaic_0001>

<bundles_post_ra>
// kernel: tpu_custom_call.1
= control target key start
LH: loop header
LB: loop body
LE: loop exit
PB: predicated region body
PF: predicated region fallthrough
CT: control target
= control target key end

     0   :  { %10 = vsyncpa [#allocation3], 0  ;;  %s577_s0 = inlined_call_operand.vmem [shape: f32[2,8,32], index: 0, kind: input, shape index: {}]   ;;  %s578_s1 = inlined_call_operand.hbm [shape: f32[32,32], index: 1, kind: input, shape index: {}]   ;;  %s579_s2 = inlined_call_operand.vmem [shape: f32[1,32], index: 2, kind: input, shape index: {}]   ;;  %s580_s3 = inlined_call_operand.vmem [shape: f32[16,4], index: 3, kind: input, shape index: {}]   ;;  %s581_s4 = inlined_call_operand.vmem [shape: f32[1,4], index: 4, kind: input, shape index: {}]   ;;  %s582_s5 = inlined_call_operand.hbm [shape: f32[2,128], index: 5, kind: output, shape index: {}]  }
   0x1   :  { %11 = vsyncpa [#allocation4], 0  ;;  %s18_s20 = sshll.u32 %s578_s1, 4  ;;  %s476_s21 = smov [#allocation2]   ;;  %s19_s20 = int_to_ptr.hbm [resolvable:$true] %s18_s20 }
   0x2   :  { %s20_s22 = sshll.u32 %s476_s21, 4  ;;  %s477_s23 = smov 128   ;;  %s21_s22 = int_to_ptr.vmem [resolvable:$true] %s20_s22 }
   0x3   :  { %s478_s24 = smov 8  }
   0x4   :  { %26 = dma.hbm_to_vmem [thread:$0]  %s19_s20, 512, %s21_s22, [#allocation3], %s477_s23, %s477_s23, %s478_s24  }
   0x5   :  { %472 = dma.done.wait [#allocation3], 512  }
   0x6   :  { %473 = vsyncadd [#allocation3], 4294966784  ;;  %v42_v0 = vld [vmem:[#allocation2 + $0x18] sm:$0xff]  ;;  %v41_v1 = vld [vmem:[#allocation2 + $0x10] sm:$0xff]  ;;  %vm47_vm0 = vcmask 261120   ;;  %vm133_vm9 = vcmask 130048  }
   0x7   :  { %378 = vmatpush.msra.mxu2 %v42_v0  ;;  %66 = vmatpush.msra.mxu0 %v42_v0  ;;  %v40_v2 = vld [vmem:[#allocation2 + $0x8] sm:$0xff]  ;;  %v39_v3 = vld [vmem:[#allocation2] sm:$0xff]  ;;  %vm163_vm10 = vcmask 31744   ;;  %v480_v59 = vmov 3   ;;  %v481_v60 = vmov 2   ;;  %v482_v63 = vmov 1  }
   0x8   :  { %v524_v4 = vld [vmem:[%s577_s0 + $0x8] sm:$0xff]  ;;  %v529_v5 = vld [vmem:[%s577_s0] sm:$0xff]  ;;  %398 = vset.pattern.permute.xlu0 %v480_v59  ;;  %397 = vset.pattern.permute.xlu2 %v481_v60  ;;  %s486_s10 = smov 96   ;;  %s487_s11 = smov [#allocation5]  }
   0x9   :  { %379 = vmatpush.msra.mxu2 %v41_v1  ;;  %67 = vmatpush.msra.mxu0 %v41_v1  ;;  %v402_v6 = vld [vmem:[%s579_s2] ss:$0 sm:$0xff]  ;;  %v128_v15 = vld [vmem:[%s580_s3 + $0x8] sm:$0xff]  ;;  %s479_s2 = smov 112   ;;  %s360_s12 = sshll.u32 %s487_s11, 4  ;;  %s361_s12 = int_to_ptr.vmem [resolvable:$true] %s360_s12 }
   0xa   :  { %382 = vmatpush.msra.mxu3 %v128_v15  ;;  %154 = vmatpush.msra.mxu1 %v128_v15  ;;  %v127_v38 = vld [vmem:[%s580_s3] sm:$0xff]  ;;  %s484_s3 = smov 64   ;;  %s362_s15 = sshll.u32 %s582_s5, 4  ;;  %s363_s15 = int_to_ptr.hbm [resolvable:$true] %s362_s15 }
   0xb   :  { %380 = vmatpush.msra.mxu2 %v40_v2  ;;  %68 = vmatpush.msra.mxu0 %v40_v2  ;;  %v403_v45 = vld [vmem:[%s581_s4] ss:$0 sm:$0xff]  ;;  %s485_s4 = smov 32  }
   0xc   :  { %383 = vmatpush.msra.mxu3 %v127_v38  ;;  %155 = vmatpush.msra.mxu1 %v127_v38 }
   0xd   :  { %381 = vmatpush.msra.mxu2 %v39_v3  ;;  %69 = vmatpush.msra.mxu0 %v39_v3 }
   0xe   :  { %373 = vmatmul.msk.f32.vlgmr.msra.gmra.mxu2 %vm47_vm0, %v524_v4  ;;  %372 = vmatmul.msk.f32.vlgmr.msra.gmra.mxu0 %vm47_vm0, %v529_v5 }
   0xf   :  { %396 = vset.pattern.permute.xlu1 %v482_v63 }
  0x8b   :  { %v71_v7 = vpop.f32.mrf.mxu0 }
  0x8c   :  { %v72_v8 = vadd.f32 %v402_v6, %v71_v7 }
  0x8e   :  { %v374_v9 = vmul.f32 -1.442695, %v72_v8 }
  0x90   :  { %404 = vpow2.f32 %v374_v9 }
  0x91   :  { %v74_v10 = vpop.f32.mrf.mxu2 }
  0x92   :  { %v75_v11 = vadd.f32 %v402_v6, %v74_v10 }
  0x94   :  { %v375_v12 = vmul.f32 -1.442695, %v75_v11 }
  0x96   :  { %v405_v13 = vpop.eup %404  ;;  %406 = vpow2.f32 %v375_v12 }
  0x97   :  { %v85_v14 = vadd.f32 1.0, %v405_v13 }
  0x99   :  { %408 = vrcp.f32 %v85_v14  ;;  %vm92_vm5 = vweird.f32 %v85_v14  ;;  %v98_v32 = vand.u32 2147483648, %v85_v14  ;;  %v96_v34 = vand.u32 2147483647, %v85_v14 }
  0x9b   :  { %v99_v35 = vor.u32 1.1754944e-38, %v98_v32  ;;  %vm97_vm8 = vcmp.eq.f32.partialorder %v96_v34, 8.507059e+37 }
  0x9c   :  { %v407_v16 = vpop.eup %406 }
  0x9d   :  { %v86_v17 = vadd.f32 1.0, %v407_v16 }
  0x9f   :  { %410 = vrcp.f32 %v86_v17  ;;  %v409_v18 = vpop.eup %408  ;;  %v113_v24 = vand.u32 2147483648, %v86_v17  ;;  %v111_v26 = vand.u32 2147483647, %v86_v17  ;;  %vm107_vm2 = vweird.f32 %v86_v17 }
  0xa0   :  { %v88_v19 = vmul.f32 %v409_v18, %v85_v14  ;;  %vm93_vm6 = vweird.f32 %v409_v18  ;;  %412 = vtanh.f32 %v75_v11 }
  0xa1   :  { %v114_v29 = vor.u32 1.1754944e-38, %v113_v24  ;;  %vm112_vm4 = vcmp.eq.f32.partialorder %v111_v26, 8.507059e+37  ;;  %vm94_vm7 = vmor %vm92_vm5, %vm93_vm6  ;;  %414 = vtanh.f32 %v72_v8  ;;  %vm350_vm5 = vcmask 523264  }
  0xa2   :  { %v89_v23 = vsub.f32 1.0, %v88_v19  ;;  %vm352_vm6 = vcmask 785408  }
  0xa4   :  { %v90_v28 = vmul.f32 %v409_v18, %v89_v23 }
  0xa5   :  { %v411_v20 = vpop.eup %410 }
  0xa6   :  { %v103_v21 = vmul.f32 %v411_v20, %v86_v17  ;;  %vm108_vm1 = vweird.f32 %v411_v20  ;;  %v91_v33 = vadd.f32 %v409_v18, %v90_v28  ;;  %v413_v39 = vpop.eup %412 }
  0xa7   :  { %vm109_vm3 = vmor %vm107_vm2, %vm108_vm1  ;;  %v415_v42 = vpop.eup %414 }
  0xa8   :  { %v104_v22 = vsub.f32 1.0, %v103_v21  ;;  %v95_v36 = vsel %vm94_vm7, %v409_v18, %v91_v33 }
  0xa9   :  { %v100_v37 = vsel %vm97_vm8, %v99_v35, %v95_v36 }
  0xaa   :  { %v105_v25 = vmul.f32 %v411_v20, %v104_v22 }
  0xac   :  { %v106_v27 = vadd.f32 %v411_v20, %v105_v25 }
  0xae   :  { %v110_v30 = vsel %vm109_vm3, %v411_v20, %v106_v27 }
  0xaf   :  { %v115_v31 = vsel %vm112_vm4, %v114_v29, %v110_v30  ;;  %vm328_vm4 = vcmask 1041409  }
  0xb0   :  { %121 = vrot.lane.b32.xlu0 %v115_v31, %s479_s2 }
  0xb8   :  { %119 = vrot.lane.b32.xlu0 %v100_v37, %s479_s2 }
 0x122   :  { %v122_v40 = vpop.permute.xlu0 %121 }
 0x123   :  { %v126_v41 = vmul.f32 %v413_v39, %v122_v40 }
 0x125   :  { %377 = vmatmul.msk.f32.vlgmr.msra.gmra.mxu3 %vm133_vm9, %v126_v41 }
 0x12a   :  { %v120_v43 = vpop.permute.xlu0 %119 }
 0x12b   :  { %v125_v44 = vmul.f32 %v415_v42, %v120_v43 }
 0x12d   :  { %376 = vmatmul.msk.f32.vlgmr.msra.gmra.mxu1 %vm133_vm9, %v125_v44 }
 0x1a8   :  { %v160_v46 = vpop.f32.mrf.mxu3 }
 0x1a9   :  { %v161_v47 = vadd.f32 %v403_v45, %v160_v46 }
 0x1aa   :  { %v157_v48 = vpop.f32.mrf.mxu1 }
 0x1ab   :  { %v171_v49 = vsel %vm163_vm10, %v161_v47, -inf  ;;  %v158_v50 = vadd.f32 %v403_v45, %v157_v48 }
 0x1ac   :  { %v172_v51 = vrot.slane %v171_v49, 4 }
 0x1ad   :  { %v164_v52 = vsel %vm163_vm10, %v158_v50, -inf }
 0x1ae   :  { %v173_v53 = vmax.f32 %v171_v49, %v172_v51  ;;  %v165_v54 = vrot.slane %v164_v52, 4 }
 0x1b0   :  { %v174_v55 = vrot.slane %v173_v53, 2  ;;  %v166_v56 = vmax.f32 %v164_v52, %v165_v54 }
 0x1b2   :  { %v175_v57 = vmax.f32 %v173_v53, %v174_v55  ;;  %v167_v58 = vrot.slane %v166_v56, 2 }
 0x1b4   :  { %v176_v61 = vrot.slane %v175_v57, 1  ;;  %v168_v62 = vmax.f32 %v166_v56, %v167_v58 }
 0x1b6   :  { %v177_v0 = vmax.f32 %v175_v57, %v176_v61  ;;  %v169_v1 = vrot.slane %v168_v62, 1 }
 0x1b8   :  { %v179_v2 = vsub.f32 %v161_v47, %v177_v0  ;;  %v170_v3 = vmax.f32 %v168_v62, %v169_v1  ;;  %v483_v47 = vmov 0  }
 0x1ba   :  { %v182_v6 = vmul.f32 1.442695, %v179_v2  ;;  %v178_v7 = vsub.f32 %v158_v50, %v170_v3 }
 0x1bc   :  { %416 = vpow2.f32 %v182_v6  ;;  %v180_v8 = vmul.f32 1.442695, %v178_v7 }
 0x1be   :  { %418 = vpow2.f32 %v180_v8 }
 0x1c2   :  { %v417_v9 = vpop.eup %416 }
 0x1c3   :  { %v191_v10 = vsel %vm163_vm10, %v417_v9, 0.0 }
 0x1c4   :  { %v419_v11 = vpop.eup %418  ;;  %v192_v12 = vrot.slane %v191_v10, 4 }
 0x1c5   :  { %v184_v13 = vsel %vm163_vm10, %v419_v11, 0.0 }
 0x1c6   :  { %v193_v14 = vadd.f32 %v192_v12, %v191_v10  ;;  %v185_v15 = vrot.slane %v184_v13, 4 }
 0x1c8   :  { %v194_v16 = vrot.slane %v193_v14, 2  ;;  %v186_v17 = vadd.f32 %v185_v15, %v184_v13 }
 0x1ca   :  { %v195_v18 = vadd.f32 %v194_v16, %v193_v14  ;;  %v187_v19 = vrot.slane %v186_v17, 2 }
 0x1cc   :  { %v196_v20 = vrot.slane %v195_v18, 1  ;;  %v188_v21 = vadd.f32 %v187_v19, %v186_v17 }
 0x1ce   :  { %v197_v22 = vadd.f32 %v196_v20, %v195_v18  ;;  %v189_v23 = vrot.slane %v188_v21, 1 }
 0x1d0   :  { %420 = vrcp.f32 %v197_v22  ;;  %v190_v24 = vadd.f32 %v189_v23, %v188_v21  ;;  %v224_v40 = vand.u32 2147483648, %v197_v22  ;;  %vm218_vm1 = vweird.f32 %v197_v22 }
 0x1d1   :  { %v222_v42 = vand.u32 2147483647, %v197_v22 }
 0x1d2   :  { %422 = vrcp.f32 %v190_v24  ;;  %v209_v31 = vand.u32 2147483648, %v190_v24  ;;  %v207_v33 = vand.u32 2147483647, %v190_v24  ;;  %vm203_vm12 = vweird.f32 %v190_v24 }
 0x1d3   :  { %v225_v44 = vor.u32 1.1754944e-38, %v224_v40  ;;  %vm223_vm3 = vcmp.eq.f32.partialorder %v222_v42, 8.507059e+37 }
 0x1d4   :  { %v210_v36 = vor.u32 1.1754944e-38, %v209_v31  ;;  %vm208_vm14 = vcmp.eq.f32.partialorder %v207_v33, 8.507059e+37 }
 0x1d6   :  { %v421_v25 = vpop.eup %420 }
 0x1d7   :  { %v214_v26 = vmul.f32 %v421_v25, %v197_v22  ;;  %vm219_vm15 = vweird.f32 %v421_v25 }
 0x1d8   :  { %v423_v27 = vpop.eup %422  ;;  %vm220_vm2 = vmor %vm218_vm1, %vm219_vm15 }
 0x1d9   :  { %v199_v28 = vmul.f32 %v423_v27, %v190_v24  ;;  %v215_v29 = vsub.f32 1.0, %v214_v26  ;;  %vm204_vm11 = vweird.f32 %v423_v27 }
 0x1da   :  { %vm205_vm13 = vmor %vm203_vm12, %vm204_vm11 }
 0x1db   :  { %v200_v30 = vsub.f32 1.0, %v199_v28  ;;  %v216_v34 = vmul.f32 %v421_v25, %v215_v29 }
 0x1dd   :  { %v201_v32 = vmul.f32 %v423_v27, %v200_v30  ;;  %v217_v38 = vadd.f32 %v421_v25, %v216_v34 }
 0x1df   :  { %v202_v35 = vadd.f32 %v423_v27, %v201_v32  ;;  %v221_v43 = vsel %vm220_vm2, %v421_v25, %v217_v38 }
 0x1e0   :  { %v226_v45 = vsel %vm223_vm3, %v225_v44, %v221_v43 }
 0x1e1   :  { %v206_v37 = vsel %vm205_vm13, %v423_v27, %v202_v35  ;;  %v227_v46 = vmul.f32 %v417_v9, %v226_v45 }
 0x1e2   :  { %v211_v39 = vsel %vm208_vm14, %v210_v36, %v206_v37 }
 0x1e3   :  { %v212_v41 = vmul.f32 %v419_v11, %v211_v39 }
 0x1e5   :  { %303 = vperm.xlu0 %398, %v212_v41   ;;  %279 = vperm.xlu2 %397, %v212_v41  }
 0x1e6   :  { %255 = vperm.xlu1 %396, %v212_v41  }
 0x1ed   :  { %283 = vperm.xlu2 %397, %v227_v46  }
 0x1ee   :  { %259 = vperm.xlu1 %396, %v227_v46  }
 0x1f5   :  { %400 = vset.pattern.permute.xlu2 %v483_v47 }
 0x1f6   :  { %399 = vset.pattern.permute.xlu1 %v480_v59  ;;  %230 = vperm.xlu2 %400, %v212_v41  }
 0x1f7   :  { %307 = vperm.xlu1 %399, %v227_v46  }
 0x1ff   :  { %401 = vset.pattern.permute.xlu1 %v483_v47 }
 0x200   :  { %235 = vperm.xlu1 %401, %v227_v46  }
 0x23f   :  { %v280_v48 = vpop.permute.xlu2 %279 }
 0x240   :  { %v286_v49 = vmul.f32 %v280_v48, %v529_v5 }
 0x242   :  { %v288_v50 = vsel %vm47_vm0, %v286_v49, 0.0 }
 0x243   :  { %v289_v51 = vrot.slane %v288_v50, 4 }
 0x245   :  { %v290_v52 = vadd.f32 %v289_v51, %v288_v50 }
 0x247   :  { %v284_v53 = vpop.permute.xlu2 %283  ;;  %v291_v55 = vrot.slane %v290_v52, 2 }
 0x248   :  { %v287_v54 = vmul.f32 %v284_v53, %v524_v4 }
 0x249   :  { %v292_v58 = vadd.f32 %v291_v55, %v290_v52 }
 0x24a   :  { %v295_v56 = vsel %vm47_vm0, %v287_v54, 0.0 }
 0x24b   :  { %v296_v57 = vrot.slane %v295_v56, 4  ;;  %v293_v61 = vrot.slane %v292_v58, 1 }
 0x24d   :  { %v297_v59 = vadd.f32 %v296_v57, %v295_v56  ;;  %v294_v0 = vadd.f32 %v293_v61, %v292_v58 }
 0x24f   :  { %v298_v60 = vrot.slane %v297_v59, 2 }
 0x250   :  { %v231_v44 = vpop.permute.xlu2 %230 }
 0x251   :  { %v299_v62 = vadd.f32 %v298_v60, %v297_v59  ;;  %v238_v46 = vmul.f32 %v231_v44, %v529_v5 }
 0x253   :  { %v300_v63 = vrot.slane %v299_v62, 1  ;;  %v240_v48 = vsel %vm47_vm0, %v238_v46, 0.0 }
 0x254   :  { %v241_v50 = vrot.slane %v240_v48, 4 }
 0x255   :  { %v301_v1 = vadd.f32 %v300_v63, %v299_v62 }
 0x256   :  { %v242_v52 = vadd.f32 %v241_v50, %v240_v48 }
 0x257   :  { %v339_v2 = vsel %vm328_vm4, %v301_v1, %v294_v0  ;;  %v304_v6 = vpop.permute.xlu0 %303 }
 0x258   :  { %v256_v3 = vpop.permute.xlu1 %255  ;;  %340 = vrot.lane.b32.xlu0 %v339_v2, %s484_s3  ;;  %v310_v9 = vmul.f32 %v304_v6, %v529_v5  ;;  %v243_v54 = vrot.slane %v242_v52, 2 }
 0x259   :  { %v262_v7 = vmul.f32 %v256_v3, %v529_v5 }
 0x25a   :  { %v312_v12 = vsel %vm47_vm0, %v310_v9, 0.0  ;;  %v244_v56 = vadd.f32 %v243_v54, %v242_v52 }
 0x25b   :  { %v264_v8 = vsel %vm47_vm0, %v262_v7, 0.0  ;;  %v313_v16 = vrot.slane %v312_v12, 4 }
 0x25c   :  { %v265_v10 = vrot.slane %v264_v8, 4  ;;  %v245_v58 = vrot.slane %v244_v56, 1 }
 0x25d   :  { %v314_v21 = vadd.f32 %v313_v16, %v312_v12 }
 0x25e   :  { %v266_v11 = vadd.f32 %v265_v10, %v264_v8  ;;  %v246_v60 = vadd.f32 %v245_v58, %v244_v56 }
 0x25f   :  { %v315_v27 = vrot.slane %v314_v21, 2 }
 0x260   :  { %v260_v13 = vpop.permute.xlu1 %259  ;;  %v267_v15 = vrot.slane %v266_v11, 2 }
 0x261   :  { %v263_v14 = vmul.f32 %v260_v13, %v524_v4  ;;  %v316_v33 = vadd.f32 %v315_v27, %v314_v21 }
 0x262   :  { %v268_v19 = vadd.f32 %v267_v15, %v266_v11 }
 0x263   :  { %v271_v17 = vsel %vm47_vm0, %v263_v14, 0.0  ;;  %v317_v37 = vrot.slane %v316_v33, 1 }
 0x264   :  { %v272_v18 = vrot.slane %v271_v17, 4  ;;  %v269_v24 = vrot.slane %v268_v19, 1 }
 0x265   :  { %v318_v40 = vadd.f32 %v317_v37, %v316_v33 }
 0x266   :  { %v273_v20 = vadd.f32 %v272_v18, %v271_v17  ;;  %v270_v31 = vadd.f32 %v269_v24, %v268_v19 }
 0x268   :  { %v274_v22 = vrot.slane %v273_v20, 2 }
 0x269   :  { %v308_v23 = vpop.permute.xlu1 %307 }
 0x26a   :  { %v275_v25 = vadd.f32 %v274_v22, %v273_v20  ;;  %v311_v26 = vmul.f32 %v308_v23, %v524_v4 }
 0x26c   :  { %v276_v28 = vrot.slane %v275_v25, 1  ;;  %v319_v29 = vsel %vm47_vm0, %v311_v26, 0.0 }
 0x26d   :  { %v320_v30 = vrot.slane %v319_v29, 4 }
 0x26e   :  { %v277_v32 = vadd.f32 %v276_v28, %v275_v25 }
 0x26f   :  { %v321_v34 = vadd.f32 %v320_v30, %v319_v29 }
 0x270   :  { %v333_v35 = vsel %vm328_vm4, %v277_v32, %v270_v31 }
 0x271   :  { %v322_v36 = vrot.slane %v321_v34, 2  ;;  %334 = vrot.lane.b32.xlu2 %v333_v35, %s485_s4 }
 0x272   :  { %v236_v43 = vpop.permute.xlu1 %235 }
 0x273   :  { %v323_v38 = vadd.f32 %v322_v36, %v321_v34  ;;  %v239_v45 = vmul.f32 %v236_v43, %v524_v4 }
 0x275   :  { %v324_v39 = vrot.slane %v323_v38, 1  ;;  %v247_v47 = vsel %vm47_vm0, %v239_v45, 0.0 }
 0x276   :  { %v248_v49 = vrot.slane %v247_v47, 4 }
 0x277   :  { %v325_v41 = vadd.f32 %v324_v39, %v323_v38 }
 0x278   :  { %v249_v51 = vadd.f32 %v248_v49, %v247_v47 }
 0x279   :  { %v345_v42 = vsel %vm328_vm4, %v325_v41, %v318_v40 }
 0x27a   :  { %346 = vrot.lane.b32.xlu1 %v345_v42, %s486_s10  ;;  %v250_v53 = vrot.slane %v249_v51, 2 }
 0x27c   :  { %v251_v55 = vadd.f32 %v250_v53, %v249_v51 }
 0x27e   :  { %v252_v57 = vrot.slane %v251_v55, 1 }
 0x280   :  { %v253_v59 = vadd.f32 %v252_v57, %v251_v55 }
 0x282   :  { %v329_v4 = vsel %vm328_vm4, %v253_v59, %v246_v60 }
 0x2ca   :  { %v341_v5 = vpop.permute.xlu0 %340 }
 0x2cb   :  { %v335_v61 = vpop.permute.xlu2 %334 }
 0x2cc   :  { %v349_v62 = vsel %vm47_vm0, %v329_v4, %v335_v61 }
 0x2cd   :  { %v351_v63 = vsel %vm350_vm5, %v349_v62, %v341_v5 }
 0x2ec   :  { %v347_v0 = vpop.permute.xlu1 %346 }
 0x2ed   :  { %v353_v1 = vsel %vm352_vm6, %v351_v63, %v347_v0 }
 0x2ee   :  { %354 = vst [vmem:[#allocation5] sm:$0x3] %v353_v1 }
 0x2ef   :  { %365 = dma.vmem_to_hbm [thread:$0]  %s361_s12, 32, %s363_s15, [#allocation4]  }
 0x2f0   :  { %474 = dma.done.wait [#allocation4], 32  }
 0x2f1   :  { %475 = vsyncadd [#allocation4], 4294967264 }
 0x2f2   :  { %370 = vsyncpa [#allocation3], 1 }
 0x2f3   :  { %371 = vsyncpa [#allocation4], 1 }

</bundles_post_ra>
